<compile_context>
chip_gen: v7x
topology: tpu7x:2x2x1
jax: 0.10.0
libtpu: 0.0.40
codegen_flags: <defaults>
</compile_context>

<pallas_src>
import jax
import jax.numpy as jnp
from jax.experimental import pallas as pl
from jax.experimental.pallas import tpu as pltpu

KH = KW = 3     # 3x3 conv, padding=1 (SAME)
LANE = 128      # TPU lane width


def _conv_relu_kernel(x_ref, w_ref, b_ref, o_ref):
    """One grid step == one group of images through Conv3x3+ReLU.

    x_ref: (imgs, H+2, lane_k)      bf16, zero-padded rows (halo + lane fill)
    w_ref: (KH*lane_k, W*Cout)      bf16, Toeplitz-expanded conv weight
    b_ref: (1, W*Cout)              f32, bias tiled per output column
    o_ref: (imgs, H, W*Cout)        bf16, lane-dense output
    """
    imgs, h, wc = o_ref.shape
    lane_k = x_ref.shape[-1]

    slab = x_ref[...]                                   # (imgs, h+2, lane_k)

    # Three row-shifted taps placed side-by-side on the lane axis; offsets are
    # multiples of lane_k (=128) -> pure vreg placement, no XLU shuffles.
    taps = [slab[:, kh:kh + h, :] for kh in range(KH)]
    patches = jnp.concatenate(taps, axis=-1)            # (imgs, h, KH*lane_k)
    # h is a multiple of 16 -> this merge reshape is bf16 tile-aligned.
    patches = patches.reshape(imgs * h, KH * lane_k)

    # Single MXU matmul with M = imgs*h rows (maximized per review).
    acc = jnp.dot(patches, w_ref[...], preferred_element_type=jnp.float32)
    acc = jnp.maximum(acc + b_ref[...], 0.0)            # bias + ReLU in f32

    o_ref[...] = acc.reshape(imgs, h, wc).astype(o_ref.dtype)


def _toeplitz_weight(weight_hwio, *, w, wp, cin, cout, lane_k):
    """Expand HWIO conv weight into B s.t. patches @ B == conv output.

    B[kh*lane_k + wcol*cin + ci, w_idx*cout + co] = W[kh, wcol - w_idx, ci, co]
    when 0 <= wcol - w_idx < KW, else 0. Rows >= wp*cin are zero, matching the
    zero lane/width padding of the input.
    """
    kh_, kw_, cin_, cout_ = weight_hwio.shape
    wcol = jnp.arange(wp)[:, None]                  # (wp, 1)
    widx = jnp.arange(w)[None, :]                   # (1, w)
    kw_idx = wcol - widx                            # (wp, w)
    valid = (kw_idx >= 0) & (kw_idx < kw_)
    kw_clamped = jnp.clip(kw_idx, 0, kw_ - 1)

    wg = weight_hwio[:, kw_clamped, :, :]           # (KH, wp, w, cin, cout)
    wg = jnp.where(valid[None, :, :, None, None], wg, 0.0)
    b = jnp.transpose(wg, (0, 1, 3, 2, 4))          # (KH, wp, cin, w, cout)
    b = b.reshape(kh_, wp * cin_, w, cout_)
    b = jnp.pad(b, ((0, 0), (0, lane_k - wp * cin_), (0, 0), (0, 0)))
    return b.reshape(kh_ * lane_k, w * cout_)


def model_data_parallel_forward(x_nchw, weight_hwio, bias, device_ids, *,
                                fold_devices=True):
    """Forward of ModelDataParallel(module=Conv3x3+ReLU, device_ids=...).

    Returns a tuple of per-device output shards (NCHW), *not* gathered,
    matching the PyTorch module's contract.

    fold_devices=True  : device axis folded into M (best on single-TC v5e/v6e).
    fold_devices=False : grid=(n_dev,), device axis marked "parallel"
                         (megacore-shardable on v7x).
    """
    n_dev = len(device_ids)
    b, cin, h, w = x_nchw.shape
    cout = weight_hwio.shape[-1]
    assert b % n_dev == 0, "batch must be an integer multiple of #devices"
    assert h % 16 == 0, "H must be a multiple of 16 (bf16 sublane packing)"
    assert (w * cout) % LANE == 0, "lane-dense output needs W*Cout % 128 == 0"
    chunk = b // n_dev
    hp, wp = h + 2, w + 2

    n_groups = 1 if fold_devices else n_dev
    imgs = b // n_groups

    # K-dim lane padding: wp*cin is rounded up to a 128 multiple so the
    # per-tap concat lands on lane boundaries. Here 72 -> 128 (~44% zero K);
    # inherent to this layout — re-derive if Cin/W change in real use.
    lane_k = ((wp * cin + LANE - 1) // LANE) * LANE

    # --- Input prep: one transpose+cast, one fused pad, one reshape. ---
    x = jnp.transpose(x_nchw, (0, 2, 3, 1)).astype(jnp.bfloat16)   # NCHW->NHWC
    if lane_k % cin == 0:
        extra_w = lane_k // cin - wp
        # Single pad: SAME halo (1 each side of H and W) + trailing zero
        # W-pixels that double as the 128-lane fill.
        x = jnp.pad(x, ((0, 0), (1, 1), (1, 1 + extra_w), (0, 0)))
        xf = x.reshape(n_groups, imgs, hp, lane_k)
    else:  # generic fallback: halo pad, then lane pad
        x = jnp.pad(x, ((0, 0), (1, 1), (1, 1), (0, 0)))
        xf = x.reshape(b, hp, wp * cin)
        xf = jnp.pad(xf, ((0, 0), (0, 0), (0, lane_k - wp * cin)))
        xf = xf.reshape(n_groups, imgs, hp, lane_k)

    wmat = _toeplitz_weight(weight_hwio.astype(jnp.float32),
                            w=w, wp=wp, cin=cin, cout=cout,
                            lane_k=lane_k).astype(jnp.bfloat16)
    bvec = jnp.tile(bias.astype(jnp.float32), w).reshape(1, w * cout)

    out_dtype = jnp.bfloat16
    flops = 2 * (b * h) * (KH * lane_k) * (w * cout)
    bytes_accessed = (xf.size * 2 + wmat.size * 2 + bvec.size * 4
                      + n_groups * imgs * h * w * cout * 2)

    out = pl.pallas_call(
        _conv_relu_kernel,
        out_shape=jax.ShapeDtypeStruct((n_groups, imgs, h, w * cout), out_dtype),
        grid_spec=pltpu.PrefetchScalarGridSpec(
            num_scalar_prefetch=0,
            grid=(n_groups,),     # 1 step (devices folded) or n_dev steps
            in_specs=[
                # per-group input slab (whole group resident for its step)
                pl.BlockSpec((None, imgs, hp, lane_k), lambda g: (g, 0, 0, 0)),
                # replicated (Toeplitz-expanded) module weight + tiled bias
                pl.BlockSpec((KH * lane_k, w * cout), lambda g: (0, 0)),
                pl.BlockSpec((1, w * cout), lambda g: (0, 0)),
            ],
            out_specs=pl.BlockSpec((None, imgs, h, w * cout),
                                   lambda g: (g, 0, 0, 0)),
        ),
        compiler_params=pltpu.CompilerParams(
            # only the (independent) device/group axis remains -> parallel;
            # on v7x with fold_devices=False this shards one group per TC.
            dimension_semantics=("parallel",),
            vmem_limit_bytes=32 * 1024 * 1024),
        cost_estimate=pl.CostEstimate(flops=flops, transcendentals=0,
                                      bytes_accessed=bytes_accessed),
    )(xf, wmat, bvec)

    # Outputs are not gathered: return per-device shards in NCHW (bf16).
    out = out.reshape(b, h, w, cout)
    out_nchw = jnp.transpose(out, (0, 3, 1, 2))
    return tuple(out_nchw[d * chunk:(d + 1) * chunk] for d in range(n_dev))


def _reference_forward(x_nchw, weight_hwio, bias, device_ids):
    """Pure-JAX reference (bf16 inputs, f32 accumulation, bf16 result)."""
    x = jnp.transpose(x_nchw, (0, 2, 3, 1)).astype(jnp.bfloat16)
    y = jax.lax.conv_general_dilated(
        x, weight_hwio.astype(jnp.bfloat16),
        window_strides=(1, 1), padding="SAME",
        dimension_numbers=("NHWC", "HWIO", "NHWC"),
        preferred_element_type=jnp.float32)
    y = jnp.maximum(y + bias.reshape(1, 1, 1, -1).astype(jnp.float32), 0.0)
    y = jnp.transpose(y, (0, 3, 1, 2)).astype(jnp.bfloat16)
    n_dev = len(device_ids)
    chunk = x_nchw.shape[0] // n_dev
    return tuple(y[d * chunk:(d + 1) * chunk] for d in range(n_dev))


if __name__ == "__main__":
    # Simulated device_ids of the data-parallel wrapper.
    device_ids = [0, 1]

    B, CIN, H, W = 4, 4, 16, 16     # batch divisible by len(device_ids)
    COUT = 8                        # W*COUT = 128 -> lane-dense output

    key = jax.random.PRNGKey(0)
    kx, kw_, kb = jax.random.split(key, 3)
    x = jax.random.normal(kx, (B, CIN, H, W), dtype=jnp.float32)             # NCHW
    weight = 0.1 * jax.random.normal(kw_, (KH, KW, CIN, COUT), jnp.float32)  # HWIO
    bias = 0.1 * jax.random.normal(kb, (COUT,), jnp.float32)

    outs = model_data_parallel_forward(x, weight, bias, device_ids)
    outs = jax.block_until_ready(outs)

    refs = _reference_forward(x, weight, bias, device_ids)
    for o, r in zip(outs, refs):
        assert o.shape == r.shape and o.dtype == r.dtype
        assert jnp.allclose(o.astype(jnp.float32), r.astype(jnp.float32),
                            atol=2e-2, rtol=2e-2), "mismatch vs reference"

    print("KERNEL_OK")
</pallas_src>

<mosaic_0001>
module attributes {stable_mosaic.version = 11 : i64} {
  func.func @_conv_relu_kernel(%arg0: i32, %arg1: memref<1x4x18x128xbf16, #tpu.memory_space<vmem>>, %arg2: memref<384x128xbf16, #tpu.memory_space<vmem>>, %arg3: memref<1x128xf32, #tpu.memory_space<vmem>>, %arg4: memref<1x4x16x128xbf16, #tpu.memory_space<vmem>>) attributes {dimension_semantics = [#tpu.dimension_semantics<parallel>], iteration_bounds = array<i64: 1>, scalar_prefetch = 0 : i64, scratch_operands = 0 : i64, tpu.core_type = #tpu.core_type<tc>, window_params = [{transform_indices = @transform_0, window_bounds = array<i64: 1, 4, 18, 128>}, {pipeline_mode = #tpu.pipeline_mode<synchronous>, transform_indices = @transform_1, window_bounds = array<i64: 384, 128>}, {pipeline_mode = #tpu.pipeline_mode<synchronous>, transform_indices = @transform_2, window_bounds = array<i64: 1, 128>}, {transform_indices = @transform_3, window_bounds = array<i64: 1, 4, 16, 128>}]} {
    %c0 = arith.constant 0 : index
    %c0_0 = arith.constant 0 : index
    %c0_1 = arith.constant 0 : index
    %c0_2 = arith.constant 0 : index
    %0 = vector.load %arg1[%c0, %c0_0, %c0_1, %c0_2] : memref<1x4x18x128xbf16, #tpu.memory_space<vmem>>, vector<1x4x18x128xbf16>
    %1 = vector.shape_cast %0 : vector<1x4x18x128xbf16> to vector<4x18x128xbf16>
    %2 = vector.extract_strided_slice %1 {offsets = [0, 0, 0], sizes = [4, 16, 128], strides = [1, 1, 1]} : vector<4x18x128xbf16> to vector<4x16x128xbf16>
    %3 = vector.extract_strided_slice %1 {offsets = [0, 1, 0], sizes = [4, 16, 128], strides = [1, 1, 1]} : vector<4x18x128xbf16> to vector<4x16x128xbf16>
    %4 = vector.extract_strided_slice %1 {offsets = [0, 2, 0], sizes = [4, 16, 128], strides = [1, 1, 1]} : vector<4x18x128xbf16> to vector<4x16x128xbf16>
    %5 = tpu.concatenate %2, %3, %4 in 2 : vector<4x16x128xbf16>, vector<4x16x128xbf16>, vector<4x16x128xbf16> -> vector<4x16x384xbf16>
    %6 = vector.shape_cast %5 : vector<4x16x384xbf16> to vector<64x384xbf16>
    %c0_3 = arith.constant 0 : index
    %c0_4 = arith.constant 0 : index
    %7 = vector.load %arg2[%c0_3, %c0_4] : memref<384x128xbf16, #tpu.memory_space<vmem>>, vector<384x128xbf16>
    %cst = arith.constant dense<0.000000e+00> : vector<64x128xf32>
    %8 = tpu.matmul %6, %7, %cst {dimension_numbers = #tpu.dot_dimension_numbers<[1], [0], [0], [1], [0, 0, 1, 1], [], []>} : vector<64x384xbf16>, vector<384x128xbf16>, vector<64x128xf32> -> vector<64x128xf32>
    %c0_5 = arith.constant 0 : index
    %c0_6 = arith.constant 0 : index
    %9 = vector.load %arg3[%c0_5, %c0_6] : memref<1x128xf32, #tpu.memory_space<vmem>>, vector<1x128xf32>
    %10 = vector.broadcast %9 : vector<1x128xf32> to vector<64x128xf32>
    %11 = arith.addf %8, %10 : vector<64x128xf32>
    %cst_7 = arith.constant 0.000000e+00 : f32
    %12 = vector.broadcast %cst_7 : f32 to vector<64x128xf32>
    %13 = arith.maximumf %11, %12 : vector<64x128xf32>
    %14 = vector.shape_cast %13 : vector<64x128xf32> to vector<4x16x128xf32>
    %15 = arith.truncf %14 : vector<4x16x128xf32> to vector<4x16x128xbf16>
    %c0_8 = arith.constant 0 : index
    %c0_9 = arith.constant 0 : index
    %c0_10 = arith.constant 0 : index
    %c0_11 = arith.constant 0 : index
    %16 = vector.load %arg4[%c0_8, %c0_9, %c0_10, %c0_11] : memref<1x4x16x128xbf16, #tpu.memory_space<vmem>>, vector<1x4x16x128xbf16>
    %17 = vector.shape_cast %16 : vector<1x4x16x128xbf16> to vector<4x16x128xbf16>
    %18 = vector.shape_cast %15 : vector<4x16x128xbf16> to vector<1x4x16x128xbf16>
    tpu.vector_store %arg4[%c0_8, %c0_9, %c0_10, %c0_11], %18 {strides = array<i32>} : memref<1x4x16x128xbf16, #tpu.memory_space<vmem>>, vector<1x4x16x128xbf16>,
    return
  }
  func.func @transform_0(%arg0: i32) -> (i32, i32, i32, i32) {
    %c0_i32 = arith.constant 0 : i32
    %c0_i32_0 = arith.constant 0 : i32
    %c0_i32_1 = arith.constant 0 : i32
    %c0_i32_2 = arith.constant 0 : i32
    return %arg0, %c0_i32, %c0_i32_0, %c0_i32_1 : i32, i32, i32, i32
  }
  func.func @transform_1(%arg0: i32) -> (i32, i32) {
    %c0_i32 = arith.constant 0 : i32
    %c0_i32_0 = arith.constant 0 : i32
    %c0_i32_1 = arith.constant 0 : i32
    return %c0_i32, %c0_i32_0 : i32, i32
  }
  func.func @transform_2(%arg0: i32) -> (i32, i32) {
    %c0_i32 = arith.constant 0 : i32
    %c0_i32_0 = arith.constant 0 : i32
    %c0_i32_1 = arith.constant 0 : i32
    return %c0_i32, %c0_i32_0 : i32, i32
  }
  func.func @transform_3(%arg0: i32) -> (i32, i32, i32, i32) {
    %c0_i32 = arith.constant 0 : i32
    %c0_i32_0 = arith.constant 0 : i32
    %c0_i32_1 = arith.constant 0 : i32
    %c0_i32_2 = arith.constant 0 : i32
    return %arg0, %c0_i32, %c0_i32_0, %c0_i32_1 : i32, i32, i32, i32
  }
}

</mosaic_0001>

<bundles_post_ra>
// kernel: tpu_custom_call.1
= control target key start
LH: loop header
LB: loop body
LE: loop exit
PB: predicated region body
PF: predicated region fallthrough
CT: control target
= control target key end

     0   :  { %8 = vsyncpa [#allocation3], 0  ;;  %s863_s0 = inlined_call_operand.vmem [shape: bf16[1,4,18,128], index: 0, kind: input, shape index: {}]   ;;  %s864_s1 = inlined_call_operand.hbm [shape: bf16[384,128], index: 1, kind: input, shape index: {}]   ;;  %s865_s2 = inlined_call_operand.vmem [shape: f32[1,128], index: 2, kind: input, shape index: {}]   ;;  %s866_s3 = inlined_call_operand.hbm [shape: bf16[1,4,16,128], index: 3, kind: output, shape index: {}]  }
   0x1   :  { %9 = vsyncpa [#allocation4], 0  ;;  %s774_s12 = smov [#allocation2]   ;;  %s726_s16 = scalar_lea.hbm %s864_s1, 3072 }
   0x2   :  { %s17_s13 = sshll.u32 %s774_s12, 4  ;;  %p727_p0 = scmp.ne.s32.totalorder %s864_s1, %s726_s16  ;;  %s18_s13 = int_to_ptr.vmem [resolvable:$true] %s17_s13 }
   0x3   :  { %p730_p1 = scmp.lt.u32.totalorder %s726_s16, %s864_s1 }
   0x5   :  { %p732_p2 = pnand %p730_p1, %p727_p0 }
   0x7   :  { %735 = shalt.err (!%p732_p2)
}
   0x8   :  { %s736_s21 = scalar_lea.vmem %s18_s13, 3072  ;;  %p741_p4 = scmp.lt.s32.totalorder %s18_s13, %s18_s13 }
   0x9   :  { %p737_p3 = scmp.ne.s32.totalorder %s18_s13, %s736_s21  ;;  %p742_p5 = scmp.lt.s32.totalorder %s736_s21, %s736_s21 }
   0xb   :  { %p743_p6 = por %p742_p5, %p741_p4 }
   0xd   :  { %p744_p7 = pnand %p743_p6, %p737_p3 }
   0xf   :  { %747 = shalt.err (!%p744_p7)
}
  0x10   :  { %s775_s22 = smov 64   ;;  %s776_s23 = smov 4  }
  0x11   :  { %23 = dma.hbm_to_vmem [thread:$0]  %s864_s1, 3072, %s18_s13, [#allocation3], %s775_s22, %s775_s22, %s776_s23  }
  0x12   :  { %770 = dma.done.wait [#allocation3], 3072  }
  0x13   :  { %771 = vsyncadd [#allocation3], 4294964224  ;;  %v694_v0 = vld [vmem:[#allocation2 + $0x40] sm:$0xff]   ;;  %v696_v2 = vld [vmem:[#allocation2 + $0x48] sm:$0xff]   ;;  %vm131_vm0 = vcmask 1046528  }
  0x14   :  { %v695_v1 = vld [vmem:[#allocation2] sm:$0xff]   ;;  %614 = vmatprep.subr.bf16.mxu0 %v694_v0  ;;  %v698_v4 = vld [vmem:[#allocation2 + $0x8] sm:$0xff]   ;;  %v699_v5 = vld [vmem:[#allocation2 + $0x50] sm:$0xff]   ;;  %vm78_vm1 = vsmask.f32 7424 }
  0x15   :  { %615 = vmatpush3.bf16.msra.mxu0 %v695_v1  ;;  %v697_v3 = vld [vmem:[#allocation2 + $0x80] sm:$0xff]   ;;  %v700_v6 = vld [vmem:[#allocation2 + $0x88] sm:$0xff]   ;;  %v701_v7 = vld [vmem:[#allocation2 + $0x10] sm:$0xff]  }
  0x16   :  { %616 = vmatprep.subr.bf16.mxu0 %v696_v2  ;;  %666 = vmatprep.subr.bf16.mxu1 %v697_v3  ;;  %v702_v8 = vld [vmem:[#allocation2 + $0x58] sm:$0xff]   ;;  %v703_v9 = vld [vmem:[#allocation2 + $0x90] sm:$0xff]   ;;  %v705_v11 = vld [vmem:[#allocation2 + $0x60] sm:$0xff]  }
  0x17   :  { %667 = vmatpush3.bf16.msra.mxu1 %v697_v3  ;;  %v704_v10 = vld [vmem:[#allocation2 + $0x18] sm:$0xff]   ;;  %v707_v13 = vld [vmem:[#allocation2 + $0x20] sm:$0xff]   ;;  %v708_v15 = vld [vmem:[#allocation2 + $0x68] sm:$0xff]  }
  0x18   :  { %668 = vmatprep.subr.bf16.mxu1 %v700_v6  ;;  %v706_v12 = vld [vmem:[#allocation2 + $0x98] sm:$0xff]   ;;  %v709_v14 = vld [vmem:[#allocation2 + $0xa0] sm:$0xff]   ;;  %v710_v16 = vld [vmem:[#allocation2 + $0x28] sm:$0xff]  }
  0x19   :  { %617 = vmatpush3.bf16.msra.mxu0 %v698_v4  ;;  %v712_v17 = vld [vmem:[#allocation2 + $0xa8] sm:$0xff]   ;;  %v711_v18 = vld [vmem:[#allocation2 + $0x70] sm:$0xff]   ;;  %v714_v20 = vld [vmem:[#allocation2 + $0x78] sm:$0xff]  }
  0x1a   :  { %618 = vmatprep.subr.bf16.mxu0 %v699_v5  ;;  %v713_v19 = vld [vmem:[#allocation2 + $0x30] sm:$0xff]   ;;  %v718_v23 = vld [vmem:[%s863_s0 + $0x8] ss:$0 sps:$4 sm:$0x11]   ;;  %v720_v31 = vld [vmem:[%s863_s0 + $0xc] sm:$0xff]  }
  0x1b   :  { %669 = vmatpush3.bf16.msra.mxu1 %v700_v6  ;;  %v715_v21 = vld [vmem:[#allocation2 + $0xb0] sm:$0xff]   ;;  %v716_v24 = vld [vmem:[#allocation2 + $0x38] sm:$0xff]   ;;  %v87_v28 = vshll.u32 %v718_v23, 16  ;;  %v133_v30 = vrot.slane %v718_v23, 1  ;;  %v722_v35 = vld [vmem:[%s863_s0 + $0x18] sm:$0xff]   ;;  %v92_v37 = vshrl.u32 %v720_v31, 16 }
  0x1c   :  { %670 = vmatprep.subr.bf16.mxu1 %v703_v9  ;;  %v717_v22 = vld [vmem:[%s863_s0] sm:$0xff]   ;;  %v719_v25 = vld [vmem:[#allocation2 + $0xb8] sm:$0xff]   ;;  %v721_v34 = vld [vmem:[%s863_s0 + $0x14] ss:$0 sps:$4 sm:$0x11]   ;;  %v94_v38 = vshll.u32 %v720_v31, 16 }
  0x1d   :  { %619 = vmatpush3.bf16.msra.mxu0 %v701_v7  ;;  %v80_v26 = vshrl.u32 %v717_v22, 16  ;;  %v82_v27 = vshll.u32 %v717_v22, 16  ;;  %v132_v29 = vrot.slane %v717_v22, 1  ;;  %v89_v33 = vrot.slane %v87_v28, 1  ;;  %v724_v43 = vld [vmem:[%s863_s0 + $0x24] sm:$0xff]  }
  0x1e   :  { %620 = vmatprep.subr.bf16.mxu0 %v702_v8  ;;  %v135_v40 = vrot.slane %v720_v31, 1  ;;  %v136_v41 = vrot.slane %v721_v34, 1  ;;  %v99_v42 = vshll.u32 %v721_v34, 16  ;;  %v96_v44 = vrot.slane %v94_v38, 1 }
  0x1f   :  { %671 = vmatpush3.bf16.msra.mxu1 %v703_v9  ;;  %v84_v32 = vrot.slane %v82_v27, 1  ;;  %v134_v36 = vsel %vm131_vm0, %v132_v29, %v133_v30  ;;  %v723_v45 = vld [vmem:[%s863_s0 + $0x20] ss:$0 sps:$4 sm:$0x11]   ;;  %v106_v46 = vshll.u32 %v722_v35, 16  ;;  %v138_v47 = vrot.slane %v722_v35, 1 }
  0x20   :  { %672 = vmatprep.subr.bf16.mxu1 %v706_v12  ;;  %682 = vmatprep.mubr.bf16.mxu1 %v134_v36  ;;  %v101_v49 = vrot.slane %v99_v42, 1  ;;  %v104_v50 = vshrl.u32 %v722_v35, 16  ;;  %v97_v51 = vor.u32 %v96_v44, %v92_v37  ;;  %v111_v53 = vshll.u32 %v723_v45, 16  ;;  %v725_v56 = vld [vmem:[%s863_s0 + $0x2c] ss:$0 sps:$4 sm:$0x11]  }
  0x21   :  { %621 = vmatpush3.bf16.msra.mxu0 %v704_v10  ;;  %v85_v39 = vor.u32 %v84_v32, %v80_v26  ;;  %v108_v52 = vrot.slane %v106_v46, 1  ;;  %v139_v54 = vrot.slane %v723_v45, 1  ;;  %v137_v55 = vsel %vm131_vm0, %v135_v40, %v136_v41  ;;  %v550_v10 = vld [vmem:[%s865_s2] ss:$0 sm:$0xff]  ;;  %s777_s2 = smov [#allocation5]  }
  0x22   :  { %622 = vmatprep.subr.bf16.mxu0 %v705_v11  ;;  %v102_v57 = vsel %vm78_vm1, %v97_v51, %v101_v49  ;;  %v113_v60 = vrot.slane %v111_v53, 1  ;;  %v118_v61 = vshll.u32 %v724_v43, 16  ;;  %v141_v62 = vrot.slane %v724_v43, 1  ;;  %s530_s15 = sshll.u32 %s777_s2, 4  ;;  %s531_s15 = int_to_ptr.vmem [resolvable:$true] %s530_s15 }
  0x23   :  { %673 = vmatpush3.bf16.msra.mxu1 %v706_v12  ;;  %v90_v48 = vsel %vm78_vm1, %v85_v39, %v89_v33  ;;  %v140_v58 = vsel %vm131_vm0, %v138_v47, %v139_v54  ;;  %v109_v59 = vor.u32 %v108_v52, %v104_v50  ;;  %v142_v63 = vrot.slane %v725_v56, 1  ;;  %s748_s16 = scalar_lea.vmem %s531_s15, 512  ;;  %p753_p9 = scmp.lt.s32.totalorder %s531_s15, %s531_s15 }
  0x24   :  { %674 = vmatprep.subr.bf16.mxu1 %v709_v14  ;;  %379 = vmatprep.mubr.bf16.mxu0 %v90_v48  ;;  %v116_v1 = vshrl.u32 %v724_v43, 16  ;;  %v120_v2 = vrot.slane %v118_v61, 1  ;;  %v123_v3 = vshll.u32 %v725_v56, 16  ;;  %p749_p8 = scmp.ne.s32.totalorder %s531_s15, %s748_s16  ;;  %p754_p10 = scmp.lt.s32.totalorder %s748_s16, %s748_s16 }
  0x25   :  { %623 = vmatpush3.bf16.msra.mxu0 %v707_v13  ;;  %v114_v0 = vsel %vm78_vm1, %v109_v59, %v113_v60  ;;  %v143_v4 = vsel %vm131_vm0, %v141_v62, %v142_v63 }
  0x26   :  { %624 = vmatprep.subr.bf16.mxu0 %v708_v15  ;;  %v121_v5 = vor.u32 %v120_v2, %v116_v1  ;;  %v125_v6 = vrot.slane %v123_v3, 1  ;;  %p755_p11 = por %p754_p10, %p753_p9 }
  0x27   :  { %675 = vmatpush3.bf16.msra.mxu1 %v709_v14 }
  0x28   :  { %676 = vmatprep.subr.bf16.mxu1 %v712_v17  ;;  %v126_v7 = vsel %vm78_vm1, %v121_v5, %v125_v6  ;;  %p756_p12 = pnand %p755_p11, %p749_p8 }
  0x29   :  { %625 = vmatpush3.bf16.msra.mxu0 %v710_v16 }
  0x2a   :  { %626 = vmatprep.subr.bf16.mxu0 %v711_v18 }
  0x2b   :  { %677 = vmatpush3.bf16.msra.mxu1 %v712_v17 }
  0x2c   :  { %678 = vmatprep.subr.bf16.mxu1 %v715_v21 }
  0x2d   :  { %627 = vmatpush3.bf16.msra.mxu0 %v713_v19 }
  0x2e   :  { %628 = vmatprep.subr.bf16.mxu0 %v714_v20 }
  0x2f   :  { %679 = vmatpush3.bf16.msra.mxu1 %v715_v21 }
  0x30   :  { %680 = vmatprep.subr.bf16.mxu1 %v719_v25 }
  0x31   :  { %629 = vmatpush3.bf16.msra.mxu0 %v716_v24 }
  0x33   :  { %681 = vmatpush3.bf16.msra.mxu1 %v719_v25 }
  0x34   :  { %380 = vmatmul.mubr.bf16.vlgmr.msra.gmra.mrb[0].mxu0 %v717_v22 }
  0x35   :  { %387 = vmatprep.mubr.bf16.mxu0 %v102_v57 }
  0x36   :  { %683 = vmatmul.mubr.bf16.vlgmr.msra.gmra.mrb[0].mxu1 %v137_v55 }
  0x37   :  { %686 = vmatprep.mubr.bf16.mxu1 %v140_v58 }
  0x3c   :  { %388 = vmatmul.mubr.bf16.gmra.mrb[4].mxu0 %v720_v31 }
  0x3d   :  { %395 = vmatprep.mubr.bf16.mxu0 %v114_v0 }
  0x3e   :  { %687 = vmatmul.mubr.bf16.gmra.mrb[4].mxu1 %v143_v4 }
  0x44   :  { %396 = vmatmul.mubr.bf16.gmra.mrb[8].mxu0 %v722_v35 }
  0x45   :  { %403 = vmatprep.mubr.bf16.mxu0 %v126_v7 }
  0x4c   :  { %404 = vmatmul.mubr.bf16.gmra.mrb[12].mxu0 %v724_v43 }
 0x107   :  { %v630_v8 = vpop.f32.mrb[0].mxu0 }
 0x108   :  { %v631_v9 = vpop.f32.mrb[1].mxu0 }
 0x109   :  { %v632_v11 = vadd.f32 %v631_v9, %v630_v8  ;;  %v633_v12 = vpop.f32.mrb[2].mxu0  ;;  %v684_v14 = vpop.f32.mrb[0].mxu1 }
 0x10a   :  { %v634_v13 = vpop.f32.mrb[3].mxu0  ;;  %v446_v17 = vpop.f32.mrb[1].mxu1 }
 0x10b   :  { %v635_v15 = vadd.f32 %v634_v13, %v633_v12  ;;  %v382_v16 = vadd.f32 %v632_v11, %v550_v10  ;;  %v685_v18 = vpop.f32.mrb[2].mxu1 }
 0x10c   :  { %v449_v21 = vpop.f32.mrb[3].mxu1 }
 0x10d   :  { %v447_v19 = vadd.f32 %v446_v17, %v382_v16  ;;  %v385_v20 = vadd.f32 %v635_v15, %v550_v10 }
 0x10f   :  { %v450_v22 = vadd.f32 %v449_v21, %v385_v20  ;;  %v636_v23 = vpop.f32.mrb[4].mxu0  ;;  %v477_v25 = vmax.f32 %v447_v19, 0.0 }
 0x110   :  { %v637_v24 = vpop.f32.mrb[5].mxu0 }
 0x111   :  { %v478_v26 = vmax.f32 %v450_v22, 0.0  ;;  %v638_v27 = vadd.f32 %v637_v24, %v636_v23  ;;  %v639_v28 = vpop.f32.mrb[6].mxu0  ;;  %v688_v30 = vpop.f32.mrb[4].mxu1 }
 0x112   :  { %v640_v29 = vpop.f32.mrb[7].mxu0  ;;  %v462_v34 = vpop.f32.mrb[5].mxu1 }
 0x113   :  { %v594_v31 = vpack.c.bf16 %v478_v26, %v477_v25  ;;  %v390_v32 = vadd.f32 %v638_v27, %v550_v10  ;;  %v641_v33 = vadd.f32 %v640_v29, %v639_v28  ;;  %v689_v35 = vpop.f32.mrb[6].mxu1 }
 0x114   :  { %v465_v38 = vpop.f32.mrb[7].mxu1 }
 0x115   :  { %595 = vst [vmem:[#allocation5] sm:$0xff] %v594_v31   ;;  %v455_v36 = vadd.f32 %v684_v14, %v390_v32  ;;  %v393_v37 = vadd.f32 %v641_v33, %v550_v10 }
 0x117   :  { %v458_v39 = vadd.f32 %v685_v18, %v393_v37  ;;  %v642_v40 = vpop.f32.mrb[8].mxu0  ;;  %v479_v42 = vmax.f32 %v455_v36, 0.0 }
 0x118   :  { %v643_v41 = vpop.f32.mrb[9].mxu0 }
 0x119   :  { %v480_v43 = vmax.f32 %v458_v39, 0.0  ;;  %v644_v44 = vadd.f32 %v643_v41, %v642_v40  ;;  %v645_v45 = vpop.f32.mrb[10].mxu0 }
 0x11a   :  { %v646_v46 = vpop.f32.mrb[11].mxu0 }
 0x11b   :  { %v599_v47 = vpack.c.bf16 %v480_v43, %v479_v42  ;;  %v647_v48 = vadd.f32 %v646_v46, %v645_v45  ;;  %v398_v49 = vadd.f32 %v644_v44, %v550_v10 }
 0x11d   :  { %611 = vst [vmem:[#allocation5 + $0x8] sm:$0xff] %v599_v47   ;;  %v463_v50 = vadd.f32 %v462_v34, %v398_v49  ;;  %v401_v51 = vadd.f32 %v647_v48, %v550_v10 }
 0x11f   :  { %v466_v52 = vadd.f32 %v465_v38, %v401_v51  ;;  %v648_v53 = vpop.f32.mrb[12].mxu0  ;;  %v481_v55 = vmax.f32 %v463_v50, 0.0 }
 0x120   :  { %v649_v54 = vpop.f32.mrb[13].mxu0 }
 0x121   :  { %v482_v56 = vmax.f32 %v466_v52, 0.0  ;;  %v650_v57 = vadd.f32 %v649_v54, %v648_v53  ;;  %v651_v58 = vpop.f32.mrb[14].mxu0 }
 0x122   :  { %v652_v59 = vpop.f32.mrb[15].mxu0 }
 0x123   :  { %v604_v60 = vpack.c.bf16 %v482_v56, %v481_v55  ;;  %v406_v61 = vadd.f32 %v650_v57, %v550_v10  ;;  %v653_v62 = vadd.f32 %v652_v59, %v651_v58 }
 0x125   :  { %612 = vst [vmem:[#allocation5 + $0x10] sm:$0xff] %v604_v60   ;;  %v471_v63 = vadd.f32 %v688_v30, %v406_v61  ;;  %v409_v0 = vadd.f32 %v653_v62, %v550_v10 }
 0x127   :  { %v474_v1 = vadd.f32 %v689_v35, %v409_v0  ;;  %v483_v2 = vmax.f32 %v471_v63, 0.0 }
 0x129   :  { %v484_v3 = vmax.f32 %v474_v1, 0.0 }
 0x12b   :  { %v609_v4 = vpack.c.bf16 %v484_v3, %v483_v2 }
 0x12d   :  { %613 = vst [vmem:[#allocation5 + $0x18] sm:$0xff] %v609_v4  }
 0x12e   :  { %759 = shalt.err (!%p756_p12)
}
 0x12f   :  { %s760_s19 = scalar_lea.hbm %s866_s3, 512 }
 0x130   :  { %p761_p13 = scmp.ne.s32.totalorder %s866_s3, %s760_s19  ;;  %p764_p0 = scmp.lt.u32.totalorder %s760_s19, %s866_s3 }
 0x132   :  { %p766_p1 = pnand %p764_p0, %p761_p13 }
 0x134   :  { %769 = shalt.err (!%p766_p1)
}
 0x135   :  { %536 = dma.vmem_to_hbm [thread:$0]  %s531_s15, 512, %s866_s3, [#allocation4], %s775_s22, %s775_s22, %s776_s23  }
 0x136   :  { %772 = dma.done.wait [#allocation4], 512  }
 0x137   :  { %773 = vsyncadd [#allocation4], 4294966784 }
 0x138   :  { %540 = vsyncpa [#allocation3], 1 }
 0x139   :  { %541 = vsyncpa [#allocation4], 1 }

</bundles_post_ra>
